<compile_context>
chip_gen: v5e
topology: v5e:2x2
jax: 0.10.0
libtpu: 0.0.40
codegen_flags: <defaults>
</compile_context>

<pallas_src>
import functools

import jax
import jax.numpy as jnp
import numpy as np
from jax.experimental import pallas as pl
from jax.experimental.pallas import tpu as pltpu

EPS = 1e-5
INPUT_DIM = 128
HIDDEN_DIMS = (64, 32)
LATENT_DIM = 16
_H1, _H2 = HIDDEN_DIMS
_VEC_WIDTH = 128  # lane width of the packed per-feature parameter slab


@functools.lru_cache(maxsize=None)
def _vmem_limit_bytes():
    """Scoped-VMEM limit: the defaults (16 MiB v5e / 32 MiB v6e,v7x) throttle
    the usable per-call batch long before physical VMEM is full.  Leave ~8 MiB
    headroom for Mosaic internals; fallback assumes v7x (64 MiB per core)."""
    cap = 64 << 20
    try:
        cap = int(pltpu.get_tpu_info().vmem_capacity_bytes)
    except Exception:
        pass
    return max(cap - (8 << 20), 32 << 20)


# ----------------------------- BN helpers -----------------------------------


def _bn_stats(h):
    """Batch-axis sum / sum-of-squares via skinny MXU matmuls (ones @ h).

    Offloads the cross-sublane reduction from the VPU/XLU to the (mostly idle)
    MXU.  `h` is kept f32 so BN math stays full precision even on the bf16
    matmul path."""
    n = h.shape[0]
    ones = jnp.ones((1, n), jnp.float32)
    s = jnp.dot(ones, h, preferred_element_type=jnp.float32)
    ss = jnp.dot(ones, h * h, preferred_element_type=jnp.float32)
    return s, ss


def _bn_scale_shift(s, ss, gamma, beta, n):
    inv_n = 1.0 / n
    mean = s * inv_n
    # One-pass variance can go slightly negative from cancellation -> clamp
    # (free VPU op; prevents rsqrt NaNs).
    var = jnp.maximum(ss * inv_n - mean * mean, 0.0)
    scale = gamma * jax.lax.rsqrt(var + EPS)  # rsqrt -> EUP slot
    shift = beta - mean * scale
    return scale, shift


def _bn_relu(h, gamma, beta):
    """Training-mode BatchNorm1d (biased var, eps=1e-5) + ReLU, one FMA + max."""
    s, ss = _bn_stats(h)
    scale, shift = _bn_scale_shift(s, ss, gamma, beta, h.shape[0])
    return jnp.maximum(h * scale + shift, 0.0)


def _hidden_stack(h1, scale1, shift1, w2_ref, w34_ref, w5_ref, vec_ref):
    """BN1+ReLU -> Linear2 -> BN2+ReLU -> fused latent pair -> BN4+ReLU ->
    Linear5 -> BN5+ReLU.  `h1` is the pre-BN first-layer activation (f32)."""
    h = jnp.maximum(h1 * scale1 + shift1, 0.0)
    h = jnp.dot(h.astype(w2_ref.dtype), w2_ref[...],
                preferred_element_type=jnp.float32)
    h = _bn_relu(h, vec_ref[2:3, 0:_H2], vec_ref[3:4, 0:_H2])
    h = jnp.dot(h.astype(w34_ref.dtype), w34_ref[...],
                preferred_element_type=jnp.float32)
    h = _bn_relu(h, vec_ref[4:5, 0:_H2], vec_ref[5:6, 0:_H2])
    h = jnp.dot(h.astype(w5_ref.dtype), w5_ref[...],
                preferred_element_type=jnp.float32)
    h = _bn_relu(h, vec_ref[6:7, 0:_H1], vec_ref[7:8, 0:_H1])
    return h


# ----------------------------- kernels ---------------------------------------


def autoencoder_kernel(x_ref, w1_ref, w2_ref, w34_ref, w5_ref, w6_ref,
                       vec_ref, o_ref):
    """Single-block path: whole batch in one VMEM block (small/irregular batch)."""
    h1 = jnp.dot(x_ref[...].astype(w1_ref.dtype), w1_ref[...],
                 preferred_element_type=jnp.float32)
    s, ss = _bn_stats(h1)
    scale1, shift1 = _bn_scale_shift(s, ss, vec_ref[0:1, 0:_H1],
                                     vec_ref[1:2, 0:_H1], h1.shape[0])
    h = _hidden_stack(h1, scale1, shift1, w2_ref, w34_ref, w5_ref, vec_ref)
    out = jnp.dot(h.astype(w6_ref.dtype), w6_ref[...],
                  preferred_element_type=jnp.float32) + vec_ref[8:9, :]
    # output_activation_type=None (module default) -> no output activation.
    o_ref[...] = out.astype(o_ref.dtype)


def autoencoder_streaming_kernel(x_ref, w1_ref, w2_ref, w34_ref, w5_ref,
                                 w6_ref, vec_ref, o_ref, h_buf, stats_buf):
    """Streaming path.  grid = (2 passes, num_chunks).

    pass 0: x chunks stream in (Pallas double-buffers), h1 = chunk @ W1 goes to
            the resident h_buf, BN1 sum / sum-sq accumulate in stats_buf.
    pass 1: at c == 0 run the whole-batch hidden stack (resident, tiny); then
            per chunk: out = h5_chunk @ W6 + b6, output DMA overlaps compute.
    """
    p = pl.program_id(0)
    c = pl.program_id(1)
    chunk = x_ref.shape[0]
    row0 = pl.multiple_of(c * chunk, chunk)
    batch = h_buf.shape[0]

    @pl.when(p == 0)
    def _stream_in():
        @pl.when(c == 0)
        def _init():
            stats_buf[...] = jnp.zeros_like(stats_buf)

        h1 = jnp.dot(x_ref[...], w1_ref[...],
                     preferred_element_type=jnp.float32)
        h_buf[pl.ds(row0, chunk), :] = h1
        s, ss = _bn_stats(h1)
        stats_buf[0:1, :] = stats_buf[0:1, :] + s
        stats_buf[1:2, :] = stats_buf[1:2, :] + ss

    @pl.when(p == 1)
    def _stream_out():
        @pl.when(c == 0)
        def _hidden():
            scale1, shift1 = _bn_scale_shift(
                stats_buf[0:1, :], stats_buf[1:2, :],
                vec_ref[0:1, 0:_H1], vec_ref[1:2, 0:_H1], batch)
            h_buf[...] = _hidden_stack(h_buf[...], scale1, shift1,
                                       w2_ref, w34_ref, w5_ref, vec_ref)

        h5 = h_buf[pl.ds(row0, chunk), :]
        out = jnp.dot(h5.astype(w6_ref.dtype), w6_ref[...],
                      preferred_element_type=jnp.float32) + vec_ref[8:9, :]
        o_ref[...] = out.astype(o_ref.dtype)


# ----------------------------- wrapper ----------------------------------------


def _pack_row(v, width=_VEC_WIDTH):
    v = jnp.ravel(v).astype(jnp.float32)
    return jnp.pad(v, (0, width - v.shape[0]))


@functools.partial(jax.jit,
                   static_argnames=("matmul_dtype", "out_dtype", "chunk"))
def autoencoder_forward(x, params, matmul_dtype=jnp.bfloat16,
                        out_dtype=jnp.float32, chunk=256):
    """Forward pass of BatchNormAutoencoder (training-mode BN, ReLU,
    no output activation).

    matmul_dtype: dtype of x / weights fed to the MXU.  Default bf16 — the
      kernel is HBM-bound at large batch, so bf16 I/O ~halves the dominant
      transfers.  BatchNorm / ReLU math is always f32."""
    (w1, b1, g1, be1,
     w2, b2, g2, be2,
     w3, b3,
     w4, b4, g4, be4,
     w5, b5, g5, be5,
     w6, b6) = params

    # Linear biases feeding training-mode BN are cancelled by the mean
    # subtraction -> drop them.  Valid only for batch-statistics BN.
    del b1, b2, b4, b5
    w34 = jnp.dot(w3, w4, preferred_element_type=jnp.float32,
                  precision=jax.lax.Precision.HIGHEST)
    del b3  # b3 @ w4 + b4 is also cancelled by the following BN

    md = matmul_dtype
    xc = x.astype(md)
    w1c, w2c, w34c, w5c, w6c = (w.astype(md) for w in (w1, w2, w34, w5, w6))

    # One packed slab for all per-feature vectors -> one DMA instead of nine.
    # rows: 0:g1 1:be1 2:g2 3:be2 4:g4 5:be4 6:g5 7:be5 8:b6
    vec = jnp.stack([
        _pack_row(g1), _pack_row(be1),
        _pack_row(g2), _pack_row(be2),
        _pack_row(g4), _pack_row(be4),
        _pack_row(g5), _pack_row(be5),
        _pack_row(b6),
    ], axis=0)

    batch = x.shape[0]
    inputs = (xc, w1c, w2c, w34c, w5c, w6c, vec)
    out_shape = jax.ShapeDtypeStruct((batch, INPUT_DIM), out_dtype)

    flops = 2 * batch * (INPUT_DIM * _H1 + _H1 * _H2 + _H2 * _H2
                         + _H2 * _H1 + _H1 * INPUT_DIM)
    transcendentals = 2 * (_H1 + _H2)
    bytes_accessed = int(sum(a.size * a.dtype.itemsize for a in inputs)
                         + batch * INPUT_DIM * jnp.dtype(out_dtype).itemsize)
    cost = pl.CostEstimate(flops=flops, transcendentals=transcendentals,
                           bytes_accessed=bytes_accessed)

    num_chunks = batch // chunk
    use_stream = (batch % chunk == 0) and (num_chunks >= 2)

    if not use_stream:
        # Small / irregular batch: whole batch as one block.  Training-mode BN
        # needs full-batch statistics, so the batch axis is never tiled blindly.
        vmem = pl.BlockSpec(memory_space=pltpu.MemorySpace.VMEM)
        return pl.pallas_call(
            autoencoder_kernel,
            out_shape=out_shape,
            in_specs=[vmem] * len(inputs),
            out_specs=vmem,
            cost_estimate=cost,
            compiler_params=pltpu.CompilerParams(
                vmem_limit_bytes=_vmem_limit_bytes()),
        )(*inputs)

    # Streaming (pipelined) path.
    last = num_chunks - 1
    x_spec = pl.BlockSpec((chunk, INPUT_DIM),
                          lambda p, c: ((1 - p) * c + p * last, 0))
    o_spec = pl.BlockSpec((chunk, INPUT_DIM), lambda p, c: (p * c, 0))

    def full(a):
        return pl.BlockSpec(a.shape, lambda p, c: (0,) * a.ndim)

    grid_spec = pltpu.PrefetchScalarGridSpec(
        num_scalar_prefetch=0,
        grid=(2, num_chunks),
        in_specs=[x_spec, full(w1c), full(w2c), full(w34c), full(w5c),
                  full(w6c), full(vec)],
        out_specs=o_spec,
        scratch_shapes=[pltpu.VMEM((batch, _H1), jnp.float32),  # resident h
                        pltpu.VMEM((2, _H1), jnp.float32)],     # BN1 sum/sumsq
    )
    return pl.pallas_call(
        autoencoder_streaming_kernel,
        out_shape=out_shape,
        grid_spec=grid_spec,
        cost_estimate=cost,
        compiler_params=pltpu.CompilerParams(
            dimension_semantics=("arbitrary", "arbitrary"),
            vmem_limit_bytes=_vmem_limit_bytes()),
    )(*inputs)


# ----------------------------- init / reference -------------------------------


def init_params(key):
    """PyTorch-default-like init: Linear weights/biases ~ U(-1/sqrt(fan_in), .),
    BatchNorm gamma=1, beta=0.  Weights stored (in_features, out_features)."""
    def linear(k, fan_in, fan_out):
        kw, kb = jax.random.split(k)
        bound = 1.0 / np.sqrt(fan_in)
        w = jax.random.uniform(kw, (fan_in, fan_out), jnp.float32, -bound, bound)
        b = jax.random.uniform(kb, (1, fan_out), jnp.float32, -bound, bound)
        return w, b

    ks = jax.random.split(key, 6)
    w1, b1 = linear(ks[0], INPUT_DIM, _H1)
    w2, b2 = linear(ks[1], _H1, _H2)
    w3, b3 = linear(ks[2], _H2, LATENT_DIM)
    w4, b4 = linear(ks[3], LATENT_DIM, _H2)
    w5, b5 = linear(ks[4], _H2, _H1)
    w6, b6 = linear(ks[5], _H1, INPUT_DIM)

    ones = lambda n: jnp.ones((1, n), jnp.float32)
    zeros = lambda n: jnp.zeros((1, n), jnp.float32)
    return (w1, b1, ones(_H1), zeros(_H1),
            w2, b2, ones(_H2), zeros(_H2),
            w3, b3,
            w4, b4, ones(_H2), zeros(_H2),
            w5, b5, ones(_H1), zeros(_H1),
            w6, b6)


def reference_forward(x, params, matmul_dtype=jnp.float32):
    """Pure-JAX reference of the ORIGINAL module semantics (all biases, two
    separate latent linears, two-pass training-mode BatchNorm1d)."""
    (w1, b1, g1, be1, w2, b2, g2, be2, w3, b3,
     w4, b4, g4, be4, w5, b5, g5, be5, w6, b6) = params

    def mm(a, b):
        return jnp.dot(a.astype(matmul_dtype), b.astype(matmul_dtype),
                       preferred_element_type=jnp.float32,
                       precision=jax.lax.Precision.HIGHEST)

    def bn_relu(h, g, be):
        mean = h.mean(0, keepdims=True)
        var = ((h - mean) ** 2).mean(0, keepdims=True)  # biased variance
        return jnp.maximum((h - mean) / jnp.sqrt(var + EPS) * g + be, 0.0)

    h = bn_relu(mm(x, w1) + b1, g1, be1)
    h = bn_relu(mm(h, w2) + b2, g2, be2)
    z = mm(h, w3) + b3
    h = bn_relu(mm(z, w4) + b4, g4, be4)
    h = bn_relu(mm(h, w5) + b5, g5, be5)
    return mm(h, w6) + b6


if __name__ == "__main__":
    key = jax.random.PRNGKey(0)
    k_x, k_p = jax.random.split(key)
    params = init_params(k_p)

    # 1) Small batch -> single-block path, f32 matmuls (tight-ish check).
    x_small = jax.random.normal(k_x, (8, INPUT_DIM), dtype=jnp.float32)
    out_small = jax.block_until_ready(
        autoencoder_forward(x_small, params, matmul_dtype=jnp.float32))
    ref_small = reference_forward(x_small, params, jnp.float32)
    np.testing.assert_allclose(np.asarray(out_small), np.asarray(ref_small),
                               rtol=2e-2, atol=2e-2)

    # 2) Larger batch -> streaming (pipelined) path, default bf16 operands.
    x_big = jax.random.normal(k_x, (1024, INPUT_DIM), dtype=jnp.float32)
    out_big = jax.block_until_ready(autoencoder_forward(x_big, params))
    ref_big = reference_forward(x_big, params, jnp.bfloat16)
    np.testing.assert_allclose(np.asarray(out_big), np.asarray(ref_big),
                               rtol=6e-2, atol=6e-2)

    print("KERNEL_OK")
</pallas_src>

<mosaic_0001>
module attributes {stable_mosaic.version = 11 : i64} {
  func.func @autoencoder_kernel(%arg0: memref<8x128xf32, #tpu.memory_space<vmem>>, %arg1: memref<128x64xf32, #tpu.memory_space<vmem>>, %arg2: memref<64x32xf32, #tpu.memory_space<vmem>>, %arg3: memref<32x32xf32, #tpu.memory_space<vmem>>, %arg4: memref<32x64xf32, #tpu.memory_space<vmem>>, %arg5: memref<64x128xf32, #tpu.memory_space<vmem>>, %arg6: memref<9x128xf32, #tpu.memory_space<vmem>>, %arg7: memref<8x128xf32, #tpu.memory_space<vmem>>) attributes {dimension_semantics = [], scalar_prefetch = 0 : i64, scratch_operands = 0 : i64, tpu.core_type = #tpu.core_type<tc>} {
    %c0 = arith.constant 0 : index
    %c0_0 = arith.constant 0 : index
    %0 = vector.load %arg0[%c0, %c0_0] : memref<8x128xf32, #tpu.memory_space<vmem>>, vector<8x128xf32>
    %c0_1 = arith.constant 0 : index
    %c0_2 = arith.constant 0 : index
    %1 = vector.load %arg1[%c0_1, %c0_2] : memref<128x64xf32, #tpu.memory_space<vmem>>, vector<128x64xf32>
    %cst = arith.constant dense<0.000000e+00> : vector<8x64xf32>
    %2 = tpu.matmul %0, %1, %cst {dimension_numbers = #tpu.dot_dimension_numbers<[1], [0], [0], [1], [0, 0, 1, 1], [], []>} : vector<8x128xf32>, vector<128x64xf32>, vector<8x64xf32> -> vector<8x64xf32>
    %cst_3 = arith.constant 1.000000e+00 : f32
    %3 = vector.broadcast %cst_3 : f32 to vector<1x8xf32>
    %cst_4 = arith.constant dense<0.000000e+00> : vector<1x64xf32>
    %4 = tpu.matmul %3, %2, %cst_4 {dimension_numbers = #tpu.dot_dimension_numbers<[1], [0], [0], [1], [0, 0, 1, 1], [], []>} : vector<1x8xf32>, vector<8x64xf32>, vector<1x64xf32> -> vector<1x64xf32>
    %5 = arith.mulf %2, %2 : vector<8x64xf32>
    %cst_5 = arith.constant dense<0.000000e+00> : vector<1x64xf32>
    %6 = tpu.matmul %3, %5, %cst_5 {dimension_numbers = #tpu.dot_dimension_numbers<[1], [0], [0], [1], [0, 0, 1, 1], [], []>} : vector<1x8xf32>, vector<8x64xf32>, vector<1x64xf32> -> vector<1x64xf32>
    %c0_6 = arith.constant 0 : index
    %c0_7 = arith.constant 0 : index
    %7 = vector.load %arg6[%c0_6, %c0_7] : memref<9x128xf32, #tpu.memory_space<vmem>>, vector<1x64xf32>
    %c1 = arith.constant 1 : index
    %c0_8 = arith.constant 0 : index
    %8 = vector.load %arg6[%c1, %c0_8] : memref<9x128xf32, #tpu.memory_space<vmem>>, vector<1x64xf32>
    %cst_9 = arith.constant 1.250000e-01 : f32
    %9 = vector.broadcast %cst_9 : f32 to vector<1x64xf32>
    %10 = arith.mulf %4, %9 : vector<1x64xf32>
    %cst_10 = arith.constant 1.250000e-01 : f32
    %11 = vector.broadcast %cst_10 : f32 to vector<1x64xf32>
    %12 = arith.mulf %6, %11 : vector<1x64xf32>
    %13 = arith.mulf %10, %10 : vector<1x64xf32>
    %14 = arith.subf %12, %13 : vector<1x64xf32>
    %cst_11 = arith.constant 0.000000e+00 : f32
    %15 = vector.broadcast %cst_11 : f32 to vector<1x64xf32>
    %16 = arith.maximumf %14, %15 : vector<1x64xf32>
    %cst_12 = arith.constant 9.99999974E-6 : f32
    %17 = vector.broadcast %cst_12 : f32 to vector<1x64xf32>
    %18 = arith.addf %16, %17 : vector<1x64xf32>
    %19 = math.rsqrt %18 : vector<1x64xf32>
    %20 = arith.mulf %7, %19 : vector<1x64xf32>
    %21 = arith.mulf %10, %20 : vector<1x64xf32>
    %22 = arith.subf %8, %21 : vector<1x64xf32>
    %23 = vector.broadcast %20 : vector<1x64xf32> to vector<8x64xf32>
    %24 = arith.mulf %2, %23 : vector<8x64xf32>
    %25 = vector.broadcast %22 : vector<1x64xf32> to vector<8x64xf32>
    %26 = arith.addf %24, %25 : vector<8x64xf32>
    %cst_13 = arith.constant 0.000000e+00 : f32
    %27 = vector.broadcast %cst_13 : f32 to vector<8x64xf32>
    %28 = arith.maximumf %26, %27 : vector<8x64xf32>
    %c0_14 = arith.constant 0 : index
    %c0_15 = arith.constant 0 : index
    %29 = vector.load %arg2[%c0_14, %c0_15] : memref<64x32xf32, #tpu.memory_space<vmem>>, vector<64x32xf32>
    %cst_16 = arith.constant dense<0.000000e+00> : vector<8x32xf32>
    %30 = tpu.matmul %28, %29, %cst_16 {dimension_numbers = #tpu.dot_dimension_numbers<[1], [0], [0], [1], [0, 0, 1, 1], [], []>} : vector<8x64xf32>, vector<64x32xf32>, vector<8x32xf32> -> vector<8x32xf32>
    %c2 = arith.constant 2 : index
    %c0_17 = arith.constant 0 : index
    %31 = vector.load %arg6[%c2, %c0_17] : memref<9x128xf32, #tpu.memory_space<vmem>>, vector<1x32xf32>
    %c3 = arith.constant 3 : index
    %c0_18 = arith.constant 0 : index
    %32 = vector.load %arg6[%c3, %c0_18] : memref<9x128xf32, #tpu.memory_space<vmem>>, vector<1x32xf32>
    %cst_19 = arith.constant 1.000000e+00 : f32
    %33 = vector.broadcast %cst_19 : f32 to vector<1x8xf32>
    %cst_20 = arith.constant dense<0.000000e+00> : vector<1x32xf32>
    %34 = tpu.matmul %33, %30, %cst_20 {dimension_numbers = #tpu.dot_dimension_numbers<[1], [0], [0], [1], [0, 0, 1, 1], [], []>} : vector<1x8xf32>, vector<8x32xf32>, vector<1x32xf32> -> vector<1x32xf32>
    %35 = arith.mulf %30, %30 : vector<8x32xf32>
    %cst_21 = arith.constant dense<0.000000e+00> : vector<1x32xf32>
    %36 = tpu.matmul %33, %35, %cst_21 {dimension_numbers = #tpu.dot_dimension_numbers<[1], [0], [0], [1], [0, 0, 1, 1], [], []>} : vector<1x8xf32>, vector<8x32xf32>, vector<1x32xf32> -> vector<1x32xf32>
    %cst_22 = arith.constant 1.250000e-01 : f32
    %37 = vector.broadcast %cst_22 : f32 to vector<1x32xf32>
    %38 = arith.mulf %34, %37 : vector<1x32xf32>
    %cst_23 = arith.constant 1.250000e-01 : f32
    %39 = vector.broadcast %cst_23 : f32 to vector<1x32xf32>
    %40 = arith.mulf %36, %39 : vector<1x32xf32>
    %41 = arith.mulf %38, %38 : vector<1x32xf32>
    %42 = arith.subf %40, %41 : vector<1x32xf32>
    %cst_24 = arith.constant 0.000000e+00 : f32
    %43 = vector.broadcast %cst_24 : f32 to vector<1x32xf32>
    %44 = arith.maximumf %42, %43 : vector<1x32xf32>
    %cst_25 = arith.constant 9.99999974E-6 : f32
    %45 = vector.broadcast %cst_25 : f32 to vector<1x32xf32>
    %46 = arith.addf %44, %45 : vector<1x32xf32>
    %47 = math.rsqrt %46 : vector<1x32xf32>
    %48 = arith.mulf %31, %47 : vector<1x32xf32>
    %49 = arith.mulf %38, %48 : vector<1x32xf32>
    %50 = arith.subf %32, %49 : vector<1x32xf32>
    %51 = vector.broadcast %48 : vector<1x32xf32> to vector<8x32xf32>
    %52 = arith.mulf %30, %51 : vector<8x32xf32>
    %53 = vector.broadcast %50 : vector<1x32xf32> to vector<8x32xf32>
    %54 = arith.addf %52, %53 : vector<8x32xf32>
    %cst_26 = arith.constant 0.000000e+00 : f32
    %55 = vector.broadcast %cst_26 : f32 to vector<8x32xf32>
    %56 = arith.maximumf %54, %55 : vector<8x32xf32>
    %c0_27 = arith.constant 0 : index
    %c0_28 = arith.constant 0 : index
    %57 = vector.load %arg3[%c0_27, %c0_28] : memref<32x32xf32, #tpu.memory_space<vmem>>, vector<32x32xf32>
    %cst_29 = arith.constant dense<0.000000e+00> : vector<8x32xf32>
    %58 = tpu.matmul %56, %57, %cst_29 {dimension_numbers = #tpu.dot_dimension_numbers<[1], [0], [0], [1], [0, 0, 1, 1], [], []>} : vector<8x32xf32>, vector<32x32xf32>, vector<8x32xf32> -> vector<8x32xf32>
    %c4 = arith.constant 4 : index
    %c0_30 = arith.constant 0 : index
    %59 = vector.load %arg6[%c4, %c0_30] : memref<9x128xf32, #tpu.memory_space<vmem>>, vector<1x32xf32>
    %c5 = arith.constant 5 : index
    %c0_31 = arith.constant 0 : index
    %60 = vector.load %arg6[%c5, %c0_31] : memref<9x128xf32, #tpu.memory_space<vmem>>, vector<1x32xf32>
    %cst_32 = arith.constant 1.000000e+00 : f32
    %61 = vector.broadcast %cst_32 : f32 to vector<1x8xf32>
    %cst_33 = arith.constant dense<0.000000e+00> : vector<1x32xf32>
    %62 = tpu.matmul %61, %58, %cst_33 {dimension_numbers = #tpu.dot_dimension_numbers<[1], [0], [0], [1], [0, 0, 1, 1], [], []>} : vector<1x8xf32>, vector<8x32xf32>, vector<1x32xf32> -> vector<1x32xf32>
    %63 = arith.mulf %58, %58 : vector<8x32xf32>
    %cst_34 = arith.constant dense<0.000000e+00> : vector<1x32xf32>
    %64 = tpu.matmul %61, %63, %cst_34 {dimension_numbers = #tpu.dot_dimension_numbers<[1], [0], [0], [1], [0, 0, 1, 1], [], []>} : vector<1x8xf32>, vector<8x32xf32>, vector<1x32xf32> -> vector<1x32xf32>
    %cst_35 = arith.constant 1.250000e-01 : f32
    %65 = vector.broadcast %cst_35 : f32 to vector<1x32xf32>
    %66 = arith.mulf %62, %65 : vector<1x32xf32>
    %cst_36 = arith.constant 1.250000e-01 : f32
    %67 = vector.broadcast %cst_36 : f32 to vector<1x32xf32>
    %68 = arith.mulf %64, %67 : vector<1x32xf32>
    %69 = arith.mulf %66, %66 : vector<1x32xf32>
    %70 = arith.subf %68, %69 : vector<1x32xf32>
    %cst_37 = arith.constant 0.000000e+00 : f32
    %71 = vector.broadcast %cst_37 : f32 to vector<1x32xf32>
    %72 = arith.maximumf %70, %71 : vector<1x32xf32>
    %cst_38 = arith.constant 9.99999974E-6 : f32
    %73 = vector.broadcast %cst_38 : f32 to vector<1x32xf32>
    %74 = arith.addf %72, %73 : vector<1x32xf32>
    %75 = math.rsqrt %74 : vector<1x32xf32>
    %76 = arith.mulf %59, %75 : vector<1x32xf32>
    %77 = arith.mulf %66, %76 : vector<1x32xf32>
    %78 = arith.subf %60, %77 : vector<1x32xf32>
    %79 = vector.broadcast %76 : vector<1x32xf32> to vector<8x32xf32>
    %80 = arith.mulf %58, %79 : vector<8x32xf32>
    %81 = vector.broadcast %78 : vector<1x32xf32> to vector<8x32xf32>
    %82 = arith.addf %80, %81 : vector<8x32xf32>
    %cst_39 = arith.constant 0.000000e+00 : f32
    %83 = vector.broadcast %cst_39 : f32 to vector<8x32xf32>
    %84 = arith.maximumf %82, %83 : vector<8x32xf32>
    %c0_40 = arith.constant 0 : index
    %c0_41 = arith.constant 0 : index
    %85 = vector.load %arg4[%c0_40, %c0_41] : memref<32x64xf32, #tpu.memory_space<vmem>>, vector<32x64xf32>
    %cst_42 = arith.constant dense<0.000000e+00> : vector<8x64xf32>
    %86 = tpu.matmul %84, %85, %cst_42 {dimension_numbers = #tpu.dot_dimension_numbers<[1], [0], [0], [1], [0, 0, 1, 1], [], []>} : vector<8x32xf32>, vector<32x64xf32>, vector<8x64xf32> -> vector<8x64xf32>
    %c6 = arith.constant 6 : index
    %c0_43 = arith.constant 0 : index
    %87 = vector.load %arg6[%c6, %c0_43] : memref<9x128xf32, #tpu.memory_space<vmem>>, vector<1x64xf32>
    %c7 = arith.constant 7 : index
    %c0_44 = arith.constant 0 : index
    %88 = vector.load %arg6[%c7, %c0_44] : memref<9x128xf32, #tpu.memory_space<vmem>>, vector<1x64xf32>
    %cst_45 = arith.constant 1.000000e+00 : f32
    %89 = vector.broadcast %cst_45 : f32 to vector<1x8xf32>
    %cst_46 = arith.constant dense<0.000000e+00> : vector<1x64xf32>
    %90 = tpu.matmul %89, %86, %cst_46 {dimension_numbers = #tpu.dot_dimension_numbers<[1], [0], [0], [1], [0, 0, 1, 1], [], []>} : vector<1x8xf32>, vector<8x64xf32>, vector<1x64xf32> -> vector<1x64xf32>
    %91 = arith.mulf %86, %86 : vector<8x64xf32>
    %cst_47 = arith.constant dense<0.000000e+00> : vector<1x64xf32>
    %92 = tpu.matmul %89, %91, %cst_47 {dimension_numbers = #tpu.dot_dimension_numbers<[1], [0], [0], [1], [0, 0, 1, 1], [], []>} : vector<1x8xf32>, vector<8x64xf32>, vector<1x64xf32> -> vector<1x64xf32>
    %cst_48 = arith.constant 1.250000e-01 : f32
    %93 = vector.broadcast %cst_48 : f32 to vector<1x64xf32>
    %94 = arith.mulf %90, %93 : vector<1x64xf32>
    %cst_49 = arith.constant 1.250000e-01 : f32
    %95 = vector.broadcast %cst_49 : f32 to vector<1x64xf32>
    %96 = arith.mulf %92, %95 : vector<1x64xf32>
    %97 = arith.mulf %94, %94 : vector<1x64xf32>
    %98 = arith.subf %96, %97 : vector<1x64xf32>
    %cst_50 = arith.constant 0.000000e+00 : f32
    %99 = vector.broadcast %cst_50 : f32 to vector<1x64xf32>
    %100 = arith.maximumf %98, %99 : vector<1x64xf32>
    %cst_51 = arith.constant 9.99999974E-6 : f32
    %101 = vector.broadcast %cst_51 : f32 to vector<1x64xf32>
    %102 = arith.addf %100, %101 : vector<1x64xf32>
    %103 = math.rsqrt %102 : vector<1x64xf32>
    %104 = arith.mulf %87, %103 : vector<1x64xf32>
    %105 = arith.mulf %94, %104 : vector<1x64xf32>
    %106 = arith.subf %88, %105 : vector<1x64xf32>
    %107 = vector.broadcast %104 : vector<1x64xf32> to vector<8x64xf32>
    %108 = arith.mulf %86, %107 : vector<8x64xf32>
    %109 = vector.broadcast %106 : vector<1x64xf32> to vector<8x64xf32>
    %110 = arith.addf %108, %109 : vector<8x64xf32>
    %cst_52 = arith.constant 0.000000e+00 : f32
    %111 = vector.broadcast %cst_52 : f32 to vector<8x64xf32>
    %112 = arith.maximumf %110, %111 : vector<8x64xf32>
    %c0_53 = arith.constant 0 : index
    %c0_54 = arith.constant 0 : index
    %113 = vector.load %arg5[%c0_53, %c0_54] : memref<64x128xf32, #tpu.memory_space<vmem>>, vector<64x128xf32>
    %cst_55 = arith.constant dense<0.000000e+00> : vector<8x128xf32>
    %114 = tpu.matmul %112, %113, %cst_55 {dimension_numbers = #tpu.dot_dimension_numbers<[1], [0], [0], [1], [0, 0, 1, 1], [], []>} : vector<8x64xf32>, vector<64x128xf32>, vector<8x128xf32> -> vector<8x128xf32>
    %c8 = arith.constant 8 : index
    %c0_56 = arith.constant 0 : index
    %115 = vector.load %arg6[%c8, %c0_56] : memref<9x128xf32, #tpu.memory_space<vmem>>, vector<1x128xf32>
    %116 = vector.broadcast %115 : vector<1x128xf32> to vector<8x128xf32>
    %117 = arith.addf %114, %116 : vector<8x128xf32>
    %c0_57 = arith.constant 0 : index
    %c0_58 = arith.constant 0 : index
    %118 = vector.load %arg7[%c0_57, %c0_58] : memref<8x128xf32, #tpu.memory_space<vmem>>, vector<8x128xf32>
    tpu.vector_store %arg7[%c0_57, %c0_58], %117 {strides = array<i32>} : memref<8x128xf32, #tpu.memory_space<vmem>>, vector<8x128xf32>,
    return
  }
}

</mosaic_0001>

<bundles_post_ra>
// kernel: autoencoder_forward.1
= control target key start
LH: loop header
LB: loop body
LE: loop exit
PB: predicated region body
PF: predicated region fallthrough
CT: control target
= control target key end

     0   :  { %s737_s0 = inlined_call_operand.vmem [shape: f32[8,128], index: 0, kind: input, shape index: {}]   ;;  %s738_s1 = inlined_call_operand.vmem [shape: f32[128,64], index: 1, kind: input, shape index: {}]   ;;  %s739_s2 = inlined_call_operand.vmem [shape: f32[64,32], index: 2, kind: input, shape index: {}]   ;;  %s740_s3 = inlined_call_operand.vmem [shape: f32[32,32], index: 3, kind: input, shape index: {}]   ;;  %s741_s4 = inlined_call_operand.vmem [shape: f32[32,64], index: 4, kind: input, shape index: {}]   ;;  %s742_s5 = inlined_call_operand.vmem [shape: f32[64,128], index: 5, kind: input, shape index: {}]   ;;  %s743_s6 = inlined_call_operand.vmem [shape: f32[9,128], index: 6, kind: input, shape index: {}]   ;;  %s744_s7 = inlined_call_operand.hbm [shape: f32[8,128], index: 7, kind: output, shape index: {}]  }
   0x1   :  { %v43_v0 = vld [vmem:[%s738_s1 + $0x78] sm:$0xff]  ;;  %v42_v1 = vld [vmem:[%s738_s1 + $0x70] sm:$0xff]  ;;  %v41_v2 = vld [vmem:[%s738_s1 + $0x68] sm:$0xff] }
   0x2   :  { %44 = vmatpush.msra.mxu0 %v43_v0  ;;  %v40_v3 = vld [vmem:[%s738_s1 + $0x60] sm:$0xff]  ;;  %v39_v4 = vld [vmem:[%s738_s1 + $0x58] sm:$0xff] }
   0x4   :  { %45 = vmatpush.msra.mxu0 %v42_v1 }
   0x6   :  { %46 = vmatpush.msra.mxu0 %v41_v2 }
   0x7   :  { %12 = vsyncpa [#allocation3], 0  ;;  %v38_v5 = vld [vmem:[%s738_s1 + $0x50] sm:$0xff]  ;;  %v37_v6 = vld [vmem:[%s738_s1 + $0x48] sm:$0xff]  ;;  %vm64_vm0 = vcmask 64512   ;;  %v522_v19 = vmov 1.0  }
   0x8   :  { %47 = vmatpush.msra.mxu0 %v40_v3  ;;  %v36_v7 = vld [vmem:[%s738_s1 + $0x40] sm:$0xff]  ;;  %v35_v8 = vld [vmem:[%s738_s1 + $0x38] sm:$0xff]  ;;  %v34_v9 = vld [vmem:[%s738_s1 + $0x30] sm:$0xff]  ;;  %vm143_vm4 = vcmask 523264   ;;  %vm238_vm8 = vcmask 261120   ;;  %s523_s20 = smov [#allocation2]  }
   0x9   :  { %v33_v10 = vld [vmem:[%s738_s1 + $0x28] sm:$0xff]  ;;  %v32_v11 = vld [vmem:[%s738_s1 + $0x20] sm:$0xff]  ;;  %v31_v12 = vld [vmem:[%s738_s1 + $0x18] sm:$0xff]  ;;  %s462_s21 = sshll.u32 %s523_s20, 4  ;;  %s464_s24 = sshll.u32 %s744_s7, 4  ;;  %s463_s21 = int_to_ptr.vmem [resolvable:$true] %s462_s21  ;;  %s465_s24 = int_to_ptr.hbm [resolvable:$true] %s464_s24 }
   0xa   :  { %48 = vmatpush.msra.mxu0 %v39_v4  ;;  %v30_v13 = vld [vmem:[%s738_s1 + $0x10] sm:$0xff]  ;;  %v29_v14 = vld [vmem:[%s738_s1 + $0x8] sm:$0xff]  ;;  %v28_v15 = vld [vmem:[%s738_s1] sm:$0xff] }
   0xb   :  { %v27_v16 = vld [vmem:[%s737_s0] sm:$0xff]  ;;  %v142_v20 = vld [vmem:[%s739_s2 + $0x38] sm:$0xff]  ;;  %v141_v22 = vld [vmem:[%s739_s2 + $0x30] sm:$0xff] }
   0xc   :  { %49 = vmatpush.msra.mxu0 %v38_v5  ;;  %155 = vmatpush.msra.mxu3 %v142_v20  ;;  %v140_v23 = vld [vmem:[%s739_s2 + $0x28] sm:$0xff]  ;;  %v139_v24 = vld [vmem:[%s739_s2 + $0x20] sm:$0xff]  ;;  %v138_v26 = vld [vmem:[%s739_s2 + $0x18] sm:$0xff] }
   0xd   :  { %v137_v27 = vld [vmem:[%s739_s2 + $0x10] sm:$0xff]  ;;  %v136_v31 = vld [vmem:[%s739_s2 + $0x8] sm:$0xff]  ;;  %v135_v33 = vld [vmem:[%s739_s2] sm:$0xff] }
   0xe   :  { %50 = vmatpush.msra.mxu0 %v37_v6  ;;  %156 = vmatpush.msra.mxu3 %v141_v22  ;;  %v109_v42 = vld [vmem:[%s743_s6] sm:$0x1]  ;;  %v110_v45 = vld [vmem:[%s743_s6 + $0x1] sm:$0x1]  ;;  %v237_v57 = vld [vmem:[%s740_s3 + $0x18] sm:$0xff] }
   0xf   :  { %v236_v58 = vld [vmem:[%s740_s3 + $0x10] sm:$0xff]  ;;  %v235_v59 = vld [vmem:[%s740_s3 + $0x8] sm:$0xff]  ;;  %v234_v61 = vld [vmem:[%s740_s3] sm:$0xff] }
  0x10   :  { %51 = vmatpush.msra.mxu0 %v36_v7  ;;  %157 = vmatpush.msra.mxu3 %v140_v23  ;;  %v332_v23 = vld [vmem:[%s741_s4 + $0x18] sm:$0xff] }
  0x12   :  { %52 = vmatpush.msra.mxu0 %v35_v8  ;;  %158 = vmatpush.msra.mxu3 %v139_v24  ;;  %v167_v8 = vld [vmem:[%s743_s6 + $0x2] sm:$0x1]  ;;  %v331_v24 = vld [vmem:[%s741_s4 + $0x10] sm:$0xff] }
  0x14   :  { %53 = vmatpush.msra.mxu0 %v34_v9  ;;  %159 = vmatpush.msra.mxu3 %v138_v26 }
  0x16   :  { %54 = vmatpush.msra.mxu0 %v33_v10  ;;  %160 = vmatpush.msra.mxu3 %v137_v27  ;;  %v330_v27 = vld [vmem:[%s741_s4 + $0x8] sm:$0xff] }
  0x18   :  { %55 = vmatpush.msra.mxu0 %v32_v11  ;;  %161 = vmatpush.msra.mxu3 %v136_v31  ;;  %v329_v31 = vld [vmem:[%s741_s4] sm:$0xff] }
  0x1a   :  { %56 = vmatpush.msra.mxu0 %v31_v12  ;;  %162 = vmatpush.msra.mxu3 %v135_v33  ;;  %v168_v12 = vld [vmem:[%s743_s6 + $0x3] sm:$0x1] }
  0x1c   :  { %57 = vmatpush.msra.mxu0 %v30_v13 }
  0x1e   :  { %58 = vmatpush.msra.mxu0 %v29_v14 }
  0x20   :  { %59 = vmatpush.msra.mxu0 %v28_v15 }
  0x21   :  { %60 = vmatmul.f32.vlgmr.msra.gmra.mxu0 %v27_v16 }
  0x9e   :  { %v61_v17 = vpop.f32.mrf.mxu0 }
  0x9f   :  { %83 = vmatpush.msra.mxu2 %v61_v17  ;;  %v88_v18 = vmul.f32 %v61_v17, %v61_v17 }
  0xa0   :  { %473 = vmatmul.msk.f32.vlgmr.msra.gmra.mxu2 %vm64_vm0, %v522_v19 }
  0xa1   :  { %104 = vmatpush.msrb.mxu2 %v88_v18 }
  0xa8   :  { %474 = vmatmul.msk.f32.vlgmr.msrb.gmra.mxu2 %vm64_vm0, %v522_v19 }
 0x123   :  { %v85_v21 = vpop.f32.mrf.mxu2 }
 0x124   :  { %v111_v25 = vmul.f32 0.125, %v85_v21 }
 0x126   :  { %v113_v29 = vmul.f32 %v111_v25, %v111_v25 }
 0x12b   :  { %v106_v28 = vpop.f32.mrf.mxu2 }
 0x12c   :  { %v112_v30 = vmul.f32 0.125, %v106_v28 }
 0x12e   :  { %v114_v32 = vsub.f32 %v112_v30, %v113_v29 }
 0x130   :  { %v115_v34 = vmax.f32 %v114_v32, 0.0 }
 0x132   :  { %v116_v35 = vadd.f32 1e-05, %v115_v34 }
 0x134   :  { %488 = vrsqrt.f32 %v116_v35  ;;  %vm123_vm2 = vweird.f32 %v116_v35 }
 0x13a   :  { %v489_v36 = vpop.eup %488 }
 0x13b   :  { %v118_v37 = vmul.f32 %v489_v36, %v116_v35  ;;  %vm124_vm1 = vweird.f32 %v489_v36 }
 0x13c   :  { %vm125_vm3 = vmor %vm123_vm2, %vm124_vm1 }
 0x13d   :  { %v119_v38 = vmul.f32 %v489_v36, %v118_v37 }
 0x13f   :  { %v120_v39 = vmul.f32 0.5, %v119_v38 }
 0x141   :  { %v121_v40 = vsub.f32 1.5, %v120_v39 }
 0x143   :  { %v122_v41 = vmul.f32 %v489_v36, %v121_v40  ;;  %v262_v40 = vld [vmem:[%s743_s6 + $0x4] sm:$0x1] }
 0x145   :  { %v126_v43 = vsel %vm125_vm3, %v489_v36, %v122_v41 }
 0x146   :  { %v127_v44 = vmul.f32 %v126_v43, %v109_v42 }
 0x148   :  { %v128_v46 = vmul.f32 %v127_v44, %v111_v25  ;;  %v130_v47 = vperm.slane %v127_v44, 0  ;;  %v263_v44 = vld [vmem:[%s743_s6 + $0x5] sm:$0x1] }
 0x14a   :  { %v129_v48 = vsub.f32 %v110_v45, %v128_v46  ;;  %v131_v49 = vmul.f32 %v130_v47, %v61_v17 }
 0x14c   :  { %v132_v50 = vperm.slane %v129_v48, 0 }
 0x14e   :  { %v133_v51 = vadd.f32 %v132_v50, %v131_v49 }
 0x150   :  { %v134_v52 = vmax.f32 %v133_v51, 0.0 }
 0x152   :  { %475 = vmatmul.msk.f32.vlgmr.msra.gmra.mxu3 %vm143_vm4, %v134_v52 }
 0x1d5   :  { %v164_v53 = vpop.f32.mrf.mxu3 }
 0x1d6   :  { %v189_v54 = vmul.f32 %v164_v53, %v164_v53  ;;  %184 = vmatpush.msra.mxu1 %v164_v53 }
 0x1d7   :  { %476 = vmatmul.msk.f32.vlgmr.msra.gmra.mxu1 %vm64_vm0, %v522_v19 }
 0x1d8   :  { %205 = vmatpush.msra.mxu2 %v189_v54  ;;  %254 = vmatpush.msrb.mxu1 %v237_v57  ;;  %v430_v54 = vld [vmem:[%s742_s5 + $0x38] sm:$0xff]  ;;  %v427_v57 = vld [vmem:[%s742_s5 + $0x20] sm:$0xff] }
 0x1d9   :  { %477 = vmatmul.msk.f32.vlgmr.msra.gmra.mxu2 %vm64_vm0, %v522_v19 }
 0x1da   :  { %255 = vmatpush.msrb.mxu1 %v236_v58 }
 0x1dc   :  { %256 = vmatpush.msrb.mxu1 %v235_v59 }
 0x1de   :  { %257 = vmatpush.msrb.mxu1 %v234_v61 }
 0x1e0   :  { %348 = vmatpush.msra.mxu1 %v332_v23  ;;  %v487_v23 = vld [vmem:[%s743_s6 + $0x8] ss:$0 sm:$0xff] }
 0x1e2   :  { %349 = vmatpush.msra.mxu1 %v331_v24 }
 0x1e4   :  { %350 = vmatpush.msra.mxu1 %v330_v27 }
 0x1e6   :  { %351 = vmatpush.msra.mxu1 %v329_v31 }
 0x254   :  { %v186_v55 = vpop.f32.mrf.mxu1 }
 0x255   :  { %v210_v56 = vmul.f32 0.125, %v186_v55  ;;  %v429_v55 = vld [vmem:[%s742_s5 + $0x30] sm:$0xff] }
 0x257   :  { %v212_v60 = vmul.f32 %v210_v56, %v210_v56 }
 0x25c   :  { %v207_v62 = vpop.f32.mrf.mxu2 }
 0x25d   :  { %v211_v63 = vmul.f32 0.125, %v207_v62 }
 0x25f   :  { %v213_v0 = vsub.f32 %v211_v63, %v212_v60  ;;  %v425_v60 = vld [vmem:[%s742_s5 + $0x10] sm:$0xff] }
 0x261   :  { %v214_v1 = vmax.f32 %v213_v0, 0.0  ;;  %v424_v0 = vld [vmem:[%s742_s5 + $0x8] sm:$0xff] }
 0x263   :  { %v215_v2 = vadd.f32 1e-05, %v214_v1 }
 0x265   :  { %490 = vrsqrt.f32 %v215_v2  ;;  %vm222_vm6 = vweird.f32 %v215_v2 }
 0x26b   :  { %v491_v3 = vpop.eup %490 }
 0x26c   :  { %v217_v4 = vmul.f32 %v491_v3, %v215_v2  ;;  %vm223_vm5 = vweird.f32 %v491_v3  ;;  %v423_v2 = vld [vmem:[%s742_s5] sm:$0xff] }
 0x26d   :  { %vm224_vm7 = vmor %vm222_vm6, %vm223_vm5 }
 0x26e   :  { %v218_v5 = vmul.f32 %v491_v3, %v217_v4 }
 0x270   :  { %v219_v6 = vmul.f32 0.5, %v218_v5 }
 0x272   :  { %v220_v7 = vsub.f32 1.5, %v219_v6 }
 0x274   :  { %v221_v9 = vmul.f32 %v491_v3, %v220_v7 }
 0x276   :  { %v225_v10 = vsel %vm224_vm7, %v491_v3, %v221_v9 }
 0x277   :  { %v226_v11 = vmul.f32 %v225_v10, %v167_v8  ;;  %v356_v10 = vld [vmem:[%s743_s6 + $0x6] sm:$0x1] }
 0x279   :  { %v227_v13 = vmul.f32 %v226_v11, %v210_v56  ;;  %v229_v14 = vperm.slane %v226_v11, 0  ;;  %v428_v56 = vld [vmem:[%s742_s5 + $0x28] sm:$0xff] }
 0x27b   :  { %v228_v15 = vsub.f32 %v168_v12, %v227_v13  ;;  %v230_v16 = vmul.f32 %v229_v14, %v164_v53  ;;  %v357_v14 = vld [vmem:[%s743_s6 + $0x7] sm:$0x1] }
 0x27d   :  { %v231_v17 = vperm.slane %v228_v15, 0 }
 0x27f   :  { %v232_v18 = vadd.f32 %v231_v17, %v230_v16 }
 0x281   :  { %v233_v20 = vmax.f32 %v232_v18, 0.0 }
 0x283   :  { %478 = vmatmul.msk.f32.vlgmr.msrb.gmra.mxu1 %vm238_vm8, %v233_v20 }
 0x284   :  { %444 = vmatpush.msrb.mxu1 %v430_v54 }
 0x286   :  { %445 = vmatpush.msrb.mxu1 %v429_v55 }
 0x288   :  { %446 = vmatpush.msrb.mxu1 %v428_v56 }
 0x28a   :  { %447 = vmatpush.msrb.mxu1 %v427_v57 }
 0x300   :  { %v259_v21 = vpop.f32.mrf.mxu1 }
 0x301   :  { %279 = vmatpush.msrb.mxu2 %v259_v21  ;;  %v284_v22 = vmul.f32 %v259_v21, %v259_v21 }
 0x302   :  { %479 = vmatmul.msk.f32.vlgmr.msrb.gmra.mxu2 %vm64_vm0, %v522_v19 }
 0x303   :  { %300 = vmatpush.msrb.mxu3 %v284_v22 }
 0x304   :  { %480 = vmatmul.msk.f32.vlgmr.msrb.gmra.mxu3 %vm64_vm0, %v522_v19 }
 0x385   :  { %v281_v25 = vpop.f32.mrf.mxu2 }
 0x386   :  { %v305_v26 = vmul.f32 0.125, %v281_v25 }
 0x387   :  { %v302_v28 = vpop.f32.mrf.mxu3 }
 0x388   :  { %v307_v29 = vmul.f32 %v305_v26, %v305_v26  ;;  %v306_v30 = vmul.f32 0.125, %v302_v28 }
 0x38a   :  { %v308_v32 = vsub.f32 %v306_v30, %v307_v29 }
 0x38c   :  { %v309_v33 = vmax.f32 %v308_v32, 0.0 }
 0x38e   :  { %v310_v34 = vadd.f32 1e-05, %v309_v33 }
 0x390   :  { %492 = vrsqrt.f32 %v310_v34  ;;  %vm317_vm10 = vweird.f32 %v310_v34 }
 0x396   :  { %v493_v35 = vpop.eup %492 }
 0x397   :  { %v312_v36 = vmul.f32 %v493_v35, %v310_v34  ;;  %vm318_vm9 = vweird.f32 %v493_v35 }
 0x398   :  { %vm319_vm11 = vmor %vm317_vm10, %vm318_vm9 }
 0x399   :  { %v313_v37 = vmul.f32 %v493_v35, %v312_v36 }
 0x39b   :  { %v314_v38 = vmul.f32 0.5, %v313_v37 }
 0x39d   :  { %v315_v39 = vsub.f32 1.5, %v314_v38 }
 0x39f   :  { %v316_v41 = vmul.f32 %v493_v35, %v315_v39 }
 0x3a1   :  { %v320_v42 = vsel %vm319_vm11, %v493_v35, %v316_v41 }
 0x3a2   :  { %v321_v43 = vmul.f32 %v320_v42, %v262_v40 }
 0x3a4   :  { %v322_v45 = vmul.f32 %v321_v43, %v305_v26  ;;  %v324_v46 = vperm.slane %v321_v43, 0 }
 0x3a6   :  { %v323_v47 = vsub.f32 %v263_v44, %v322_v45  ;;  %v325_v48 = vmul.f32 %v324_v46, %v259_v21 }
 0x3a8   :  { %v326_v49 = vperm.slane %v323_v47, 0 }
 0x3aa   :  { %v327_v50 = vadd.f32 %v326_v49, %v325_v48 }
 0x3ac   :  { %v328_v51 = vmax.f32 %v327_v50, 0.0 }
 0x3ae   :  { %481 = vmatmul.msk.f32.vlgmr.msra.gmra.mxu1 %vm238_vm8, %v328_v51 }
 0x42b   :  { %v353_v52 = vpop.f32.mrf.mxu1 }
 0x42c   :  { %v378_v53 = vmul.f32 %v353_v52, %v353_v52  ;;  %373 = vmatpush.msra.mxu2 %v353_v52 }
 0x42d   :  { %482 = vmatmul.msk.f32.vlgmr.msra.gmra.mxu2 %vm64_vm0, %v522_v19 }
 0x42e   :  { %394 = vmatpush.msra.mxu3 %v378_v53 }
 0x42f   :  { %483 = vmatmul.msk.f32.vlgmr.msra.gmra.mxu3 %vm64_vm0, %v522_v19  ;;  %v426_v19 = vld [vmem:[%s742_s5 + $0x18] sm:$0xff] }
 0x430   :  { %448 = vmatpush.msrb.mxu1 %v426_v19 }
 0x432   :  { %449 = vmatpush.msrb.mxu1 %v425_v60 }
 0x434   :  { %450 = vmatpush.msrb.mxu1 %v424_v0 }
 0x436   :  { %451 = vmatpush.msrb.mxu1 %v423_v2 }
 0x4b0   :  { %v375_v58 = vpop.f32.mrf.mxu2 }
 0x4b1   :  { %v399_v59 = vmul.f32 0.125, %v375_v58 }
 0x4b2   :  { %v396_v61 = vpop.f32.mrf.mxu3 }
 0x4b3   :  { %v401_v62 = vmul.f32 %v399_v59, %v399_v59  ;;  %v400_v63 = vmul.f32 0.125, %v396_v61 }
 0x4b5   :  { %v402_v1 = vsub.f32 %v400_v63, %v401_v62 }
 0x4b7   :  { %v403_v3 = vmax.f32 %v402_v1, 0.0 }
 0x4b9   :  { %v404_v4 = vadd.f32 1e-05, %v403_v3 }
 0x4bb   :  { %494 = vrsqrt.f32 %v404_v4  ;;  %vm411_vm13 = vweird.f32 %v404_v4 }
 0x4c1   :  { %v495_v5 = vpop.eup %494 }
 0x4c2   :  { %v406_v6 = vmul.f32 %v495_v5, %v404_v4  ;;  %vm412_vm12 = vweird.f32 %v495_v5 }
 0x4c3   :  { %vm413_vm14 = vmor %vm411_vm13, %vm412_vm12 }
 0x4c4   :  { %v407_v7 = vmul.f32 %v495_v5, %v406_v6 }
 0x4c6   :  { %v408_v8 = vmul.f32 0.5, %v407_v7 }
 0x4c8   :  { %v409_v9 = vsub.f32 1.5, %v408_v8 }
 0x4ca   :  { %v410_v11 = vmul.f32 %v495_v5, %v409_v9 }
 0x4cc   :  { %v414_v12 = vsel %vm413_vm14, %v495_v5, %v410_v11 }
 0x4cd   :  { %v415_v13 = vmul.f32 %v414_v12, %v356_v10 }
 0x4cf   :  { %v416_v15 = vmul.f32 %v415_v13, %v399_v59  ;;  %v418_v16 = vperm.slane %v415_v13, 0 }
 0x4d1   :  { %v417_v17 = vsub.f32 %v357_v14, %v416_v15  ;;  %v419_v18 = vmul.f32 %v418_v16, %v353_v52 }
 0x4d3   :  { %v420_v20 = vperm.slane %v417_v17, 0 }
 0x4d5   :  { %v421_v21 = vadd.f32 %v420_v20, %v419_v18 }
 0x4d7   :  { %v422_v22 = vmax.f32 %v421_v21, 0.0 }
 0x4d9   :  { %484 = vmatmul.msk.f32.vlgmr.msrb.gmra.mxu1 %vm143_vm4, %v422_v22 }
 0x556   :  { %v453_v24 = vpop.f32.mrf.mxu1 }
 0x557   :  { %v454_v25 = vadd.f32 %v487_v23, %v453_v24 }
 0x559   :  { %456 = vst [vmem:[#allocation2] sm:$0xff] %v454_v25 }
 0x55a   :  { %467 = dma.vmem_to_hbm [thread:$0]  %s463_s21, 128, %s465_s24, [#allocation3]  }
 0x55b   :  { %520 = dma.done.wait [#allocation3], 128  }
 0x55c   :  { %521 = vsyncadd [#allocation3], 4294967168 }
 0x55d   :  { %472 = vsyncpa [#allocation3], 1 }

</bundles_post_ra>
